<compile_context>
chip_gen: v7x
topology: tpu7x:2x2x1
jax: 0.10.0
libtpu: 0.0.40
codegen_flags: <defaults>
</compile_context>

<pallas_src>
import math

import jax
import jax.numpy as jnp
from jax.experimental import pallas as pl
from jax.experimental.pallas import tpu as pltpu


def _round_up(x, n):
    return ((x + n - 1) // n) * n


def _itd_kernel(x_ref, w_ref, b_ref, o_ref):
    # out = exp(-relu(x * w + b)); elementwise, fully lane-dense.
    x = x_ref[...].astype(jnp.float32)
    gamma = jnp.maximum(x * w_ref[...] + b_ref[...], 0.0)
    o_ref[...] = jnp.exp(-gamma).astype(o_ref.dtype)


def input_temporal_decay(d, W, b, m=None, *, tile_rows=1024):
    """d: (..., input_size). Returns exp(-relu(linear(d, W*m, b))), shape (..., input_size)."""
    D = d.shape[-1]
    lead = d.shape[:-1]
    M = math.prod(lead) if lead else 1

    if m is None:
        m = jnp.eye(D, dtype=W.dtype)
    # Identity mask => masked linear is a per-feature (diagonal) affine.
    w_eff = jnp.diagonal(W * m).astype(jnp.float32)          # (D,)
    b_eff = b.astype(jnp.float32)                            # (D,)

    flat = d.reshape(M, D)

    if 128 % D == 0:
        # Lane-dense packing: put 128/D feature vectors on each 128-lane row.
        r = 128 // D
        lane = 128
        lane_w = jnp.tile(w_eff, r).reshape(1, lane)
        lane_b = jnp.tile(b_eff, r).reshape(1, lane)
        rows_needed = pl.cdiv(M, r)
        tile = _round_up(min(tile_rows, _round_up(rows_needed, 8)), 8)
        rows_pad = _round_up(rows_needed, tile)
        m_pad = rows_pad * r
        if m_pad > M:
            flat = jnp.pad(flat, ((0, m_pad - M), (0, 0)))
        x = flat.reshape(rows_pad, lane)
    else:
        # Fallback: rows x full-feature blocks (last block dim == full array dim).
        lane = D
        lane_w = w_eff.reshape(1, lane)
        lane_b = b_eff.reshape(1, lane)
        tile = _round_up(min(tile_rows, _round_up(M, 8)), 8)
        rows_pad = _round_up(M, tile)
        if rows_pad > M:
            flat = jnp.pad(flat, ((0, rows_pad - M), (0, 0)))
        x = flat

    grid = (rows_pad // tile,)
    full = lambda i: (0, 0)

    out = pl.pallas_call(
        _itd_kernel,
        out_shape=jax.ShapeDtypeStruct((rows_pad, lane), d.dtype),
        grid_spec=pltpu.PrefetchScalarGridSpec(
            num_scalar_prefetch=0,
            grid=grid,
            in_specs=[
                pl.BlockSpec((tile, lane), lambda i: (i, 0)),   # activation rows
                pl.BlockSpec((1, lane), full),                  # per-lane scale
                pl.BlockSpec((1, lane), full),                  # per-lane bias
            ],
            out_specs=pl.BlockSpec((tile, lane), lambda i: (i, 0)),
        ),
        compiler_params=pltpu.CompilerParams(
            dimension_semantics=("parallel",)),
    )(x, lane_w, lane_b)

    return out.reshape(-1, D)[:M].reshape(*lead, D)


def init_params(key, input_size):
    """PyTorch-style init: uniform(+/- 1/sqrt(input_size)) for W and b; identity mask."""
    kw, kb = jax.random.split(key, 2)
    stdv = 1.0 / math.sqrt(input_size)
    W = jax.random.uniform(kw, (input_size, input_size), jnp.float32, -stdv, stdv)
    b = jax.random.uniform(kb, (input_size,), jnp.float32, -stdv, stdv)
    m = jnp.eye(input_size, dtype=jnp.float32)
    return W, b, m


def _reference(d, W, b, m):
    # Literal translation of the PyTorch forward.
    gamma = jax.nn.relu(d @ (W * m).T + b)
    return jnp.exp(-gamma)


if __name__ == "__main__":
    key = jax.random.PRNGKey(0)
    k_d, k_p = jax.random.split(key, 2)

    B, S, input_size = 2, 8, 32
    d = jax.random.uniform(k_d, (B, S, input_size), jnp.float32, 0.0, 5.0)
    W, b, m = init_params(k_p, input_size)

    out = input_temporal_decay(d, W, b, m)
    out = jax.block_until_ready(out)

    ref = _reference(d, W, b, m)
    assert out.shape == (B, S, input_size), out.shape
    assert jnp.allclose(out, ref, atol=1e-5, rtol=1e-5), \
        float(jnp.max(jnp.abs(out - ref)))

    print("KERNEL_OK")
</pallas_src>

<mosaic_0001>
module attributes {stable_mosaic.version = 11 : i64} {
  func.func @_itd_kernel(%arg0: i32, %arg1: memref<8x128xf32, #tpu.memory_space<vmem>>, %arg2: memref<1x128xf32, #tpu.memory_space<vmem>>, %arg3: memref<1x128xf32, #tpu.memory_space<vmem>>, %arg4: memref<8x128xf32, #tpu.memory_space<vmem>>) attributes {dimension_semantics = [#tpu.dimension_semantics<parallel>], iteration_bounds = array<i64: 1>, scalar_prefetch = 0 : i64, scratch_operands = 0 : i64, tpu.core_type = #tpu.core_type<tc>, window_params = [{transform_indices = @transform_0, window_bounds = array<i64: 8, 128>}, {pipeline_mode = #tpu.pipeline_mode<synchronous>, transform_indices = @transform_1, window_bounds = array<i64: 1, 128>}, {pipeline_mode = #tpu.pipeline_mode<synchronous>, transform_indices = @transform_2, window_bounds = array<i64: 1, 128>}, {transform_indices = @transform_3, window_bounds = array<i64: 8, 128>}]} {
    %c0 = arith.constant 0 : index
    %c0_0 = arith.constant 0 : index
    %0 = vector.load %arg1[%c0, %c0_0] : memref<8x128xf32, #tpu.memory_space<vmem>>, vector<8x128xf32>
    %c0_1 = arith.constant 0 : index
    %c0_2 = arith.constant 0 : index
    %1 = vector.load %arg2[%c0_1, %c0_2] : memref<1x128xf32, #tpu.memory_space<vmem>>, vector<1x128xf32>
    %2 = vector.broadcast %1 : vector<1x128xf32> to vector<8x128xf32>
    %3 = arith.mulf %0, %2 : vector<8x128xf32>
    %c0_3 = arith.constant 0 : index
    %c0_4 = arith.constant 0 : index
    %4 = vector.load %arg3[%c0_3, %c0_4] : memref<1x128xf32, #tpu.memory_space<vmem>>, vector<1x128xf32>
    %5 = vector.broadcast %4 : vector<1x128xf32> to vector<8x128xf32>
    %6 = arith.addf %3, %5 : vector<8x128xf32>
    %cst = arith.constant 0.000000e+00 : f32
    %7 = vector.broadcast %cst : f32 to vector<8x128xf32>
    %8 = arith.maximumf %6, %7 : vector<8x128xf32>
    %cst_5 = arith.constant 0.000000e+00 : f32
    %9 = vector.broadcast %cst_5 : f32 to vector<8x128xf32>
    %10 = arith.subf %9, %8 : vector<8x128xf32>
    %11 = math.exp %10 : vector<8x128xf32>
    %c0_6 = arith.constant 0 : index
    %c0_7 = arith.constant 0 : index
    %12 = vector.load %arg4[%c0_6, %c0_7] : memref<8x128xf32, #tpu.memory_space<vmem>>, vector<8x128xf32>
    tpu.vector_store %arg4[%c0_6, %c0_7], %11 {strides = array<i32>} : memref<8x128xf32, #tpu.memory_space<vmem>>, vector<8x128xf32>,
    return
  }
  func.func @transform_0(%arg0: i32) -> (i32, i32) {
    %c0_i32 = arith.constant 0 : i32
    %c0_i32_0 = arith.constant 0 : i32
    return %arg0, %c0_i32 : i32, i32
  }
  func.func @transform_1(%arg0: i32) -> (i32, i32) {
    %c0_i32 = arith.constant 0 : i32
    %c0_i32_0 = arith.constant 0 : i32
    %c0_i32_1 = arith.constant 0 : i32
    return %c0_i32, %c0_i32_0 : i32, i32
  }
  func.func @transform_2(%arg0: i32) -> (i32, i32) {
    %c0_i32 = arith.constant 0 : i32
    %c0_i32_0 = arith.constant 0 : i32
    %c0_i32_1 = arith.constant 0 : i32
    return %c0_i32, %c0_i32_0 : i32, i32
  }
  func.func @transform_3(%arg0: i32) -> (i32, i32) {
    %c0_i32 = arith.constant 0 : i32
    %c0_i32_0 = arith.constant 0 : i32
    return %arg0, %c0_i32 : i32, i32
  }
}

</mosaic_0001>

<bundles_post_ra>
// kernel: tpu_custom_call.1
= control target key start
LH: loop header
LB: loop body
LE: loop exit
PB: predicated region body
PF: predicated region fallthrough
CT: control target
= control target key end

     0   :  { %8 = vsyncpa [#allocation3], 0  ;;  %s170_s0 = inlined_call_operand.hbm [shape: f32[8,128], index: 0, kind: input, shape index: {}]   ;;  %s171_s1 = inlined_call_operand.vmem [shape: f32[1,128], index: 1, kind: input, shape index: {}]   ;;  %s172_s2 = inlined_call_operand.vmem [shape: f32[1,128], index: 2, kind: input, shape index: {}]   ;;  %s173_s3 = inlined_call_operand.hbm [shape: f32[8,128], index: 3, kind: output, shape index: {}]  }
   0x1   :  { %9 = vsyncpa [#allocation4], 0  ;;  %s118_s12 = smov [#allocation2]   ;;  %s70_s16 = scalar_lea.hbm %s170_s0, 128 }
   0x2   :  { %s16_s13 = sshll.u32 %s118_s12, 4  ;;  %p71_p0 = scmp.ne.s32.totalorder %s170_s0, %s70_s16  ;;  %s17_s13 = int_to_ptr.vmem [resolvable:$true] %s16_s13 }
   0x3   :  { %p74_p1 = scmp.lt.u32.totalorder %s70_s16, %s170_s0 }
   0x5   :  { %p76_p2 = pnand %p74_p1, %p71_p0 }
   0x7   :  { %79 = shalt.err (!%p76_p2)
}
   0x8   :  { %s80_s21 = scalar_lea.vmem %s17_s13, 128  ;;  %p85_p4 = scmp.lt.s32.totalorder %s17_s13, %s17_s13 }
   0x9   :  { %p81_p3 = scmp.ne.s32.totalorder %s17_s13, %s80_s21  ;;  %p86_p5 = scmp.lt.s32.totalorder %s80_s21, %s80_s21 }
   0xb   :  { %p87_p6 = por %p86_p5, %p85_p4 }
   0xd   :  { %p88_p7 = pnand %p87_p6, %p81_p3 }
   0xf   :  { %91 = shalt.err (!%p88_p7)
}
  0x10   :  { %19 = dma.hbm_to_vmem [thread:$0]  %s170_s0, 128, %s17_s13, [#allocation3]  }
  0x11   :  { %114 = dma.done.wait [#allocation3], 128  }
  0x12   :  { %115 = vsyncadd [#allocation3], 4294967168  ;;  %v27_v0 = vld [vmem:[#allocation2] sm:$0xff]  ;;  %s119_s28 = smov [#allocation5]  }
  0x13   :  { %v64_v1 = vld [vmem:[%s171_s1] ss:$0 sm:$0xff]  ;;  %s55_s29 = sshll.u32 %s119_s28, 4  ;;  %s56_s29 = int_to_ptr.vmem [resolvable:$true] %s55_s29 }
  0x14   :  { %v65_v2 = vld [vmem:[%s172_s2] ss:$0 sm:$0xff]  ;;  %v35_v3 = vmul.f32 %v64_v1, %v27_v0  ;;  %s92_s0 = scalar_lea.vmem %s56_s29, 128  ;;  %p97_p9 = scmp.lt.s32.totalorder %s56_s29, %s56_s29 }
  0x15   :  { %p93_p8 = scmp.ne.s32.totalorder %s56_s29, %s92_s0  ;;  %p98_p10 = scmp.lt.s32.totalorder %s92_s0, %s92_s0 }
  0x16   :  { %v43_v4 = vadd.f32 %v65_v2, %v35_v3 }
  0x17   :  { %p99_p11 = por %p98_p10, %p97_p9 }
  0x18   :  { %v44_v5 = vmax.f32 %v43_v4, 0.0 }
  0x19   :  { %p100_p12 = pnand %p99_p11, %p93_p8 }
  0x1a   :  { %v45_v6 = vsub.f32 0.0, %v44_v5 }
  0x1c   :  { %v46_v7 = vmul.f32 1.442695, %v45_v6 }
  0x1e   :  { %68 = vpow2.f32 %v46_v7 }
  0x28   :  { %v69_v8 = vpop.eup %68 }
  0x29   :  { %48 = vst [vmem:[#allocation5] sm:$0xff] %v69_v8 }
  0x2a   :  { %103 = shalt.err (!%p100_p12)
}
  0x2b   :  { %s104_s30 = scalar_lea.hbm %s173_s3, 128 }
  0x2c   :  { %p105_p13 = scmp.ne.s32.totalorder %s173_s3, %s104_s30  ;;  %p108_p0 = scmp.lt.u32.totalorder %s104_s30, %s173_s3 }
  0x2e   :  { %p110_p1 = pnand %p108_p0, %p105_p13 }
  0x30   :  { %113 = shalt.err (!%p110_p1)
}
  0x31   :  { %58 = dma.vmem_to_hbm [thread:$0]  %s56_s29, 128, %s173_s3, [#allocation4]  }
  0x32   :  { %116 = dma.done.wait [#allocation4], 128  }
  0x33   :  { %117 = vsyncadd [#allocation4], 4294967168 }
  0x34   :  { %62 = vsyncpa [#allocation3], 1 }
  0x35   :  { %63 = vsyncpa [#allocation4], 1 }

</bundles_post_ra>
